<compile_context>
chip_gen: v5e
topology: v5e:2x2
jax: 0.10.0
libtpu: 0.0.40
codegen_flags: <defaults>
</compile_context>

<pallas_src>
import functools

import numpy as np

import jax
import jax.numpy as jnp
from jax import lax
from jax.experimental import pallas as pl
from jax.experimental.pallas import tpu as pltpu


def _round_up(x, m):
    return -(-x // m) * m


def _tile_and_pad(dim, preferred, align):
    """Pick an aligned tile <= preferred and the padded dim it divides."""
    preferred = _round_up(preferred, align)
    tile = preferred if dim >= preferred else _round_up(dim, align)
    return tile, _round_up(dim, tile)


# --------------------------------------------------------------------------
# Pass A: scale[0, j] = m[0, j] / || (W + A @ B)[:, j] ||_2
# Grid: (d_in tiles ["parallel"], d_out tiles ["arbitrary" reduction]).
# --------------------------------------------------------------------------
def _col_scale_kernel(w_ref, a_ref, b_ref, m_ref, scale_ref, acc_ref, *,
                      precision):
    j = pl.program_id(1)

    @pl.when(j == 0)
    def _init():
        acc_ref[...] = jnp.zeros_like(acc_ref)

    lora = jnp.dot(a_ref[...], b_ref[...], precision=precision,
                   preferred_element_type=jnp.float32)
    adapted = w_ref[...].astype(jnp.float32) + lora          # (tn, tk) f32
    sq = adapted * adapted

    # Fold tn sublanes down to 8 with VPU adds over tile-aligned 8-row slices;
    # the single cross-sublane (XLU) reduce happens only in the finalize.
    tn = sq.shape[0]
    partial = sq[0:8]
    for i in range(1, tn // 8):
        partial = partial + sq[i * 8:(i + 1) * 8]
    acc_ref[...] += partial

    @pl.when(j == pl.num_programs(1) - 1)
    def _finalize():
        col_sumsq = jnp.sum(acc_ref[...], axis=0, keepdims=True)   # (1, tk)
        # rsqrt -> EUP; m and 1/column_norm fused into a single scale vector.
        # TODO(synk): no epsilon (matches the PyTorch reference; inf/nan if a
        # real column of (W + A@B) is exactly zero).
        scale_ref[...] = (m_ref[...] * lax.rsqrt(col_sumsq)).astype(
            scale_ref.dtype)


# --------------------------------------------------------------------------
# Pass B: u = (x * scale) @ B.T    -> (batch, r_pad), f32
# Grid: (batch tiles ["parallel"], d_in tiles ["arbitrary" reduction]).
# --------------------------------------------------------------------------
def _lora_proj_kernel(x_ref, scale_ref, b_ref, u_ref, *, compute_dtype,
                      precision):
    k = pl.program_id(1)

    @pl.when(k == 0)
    def _init():
        u_ref[...] = jnp.zeros_like(u_ref)

    xs = (x_ref[...].astype(jnp.float32) * scale_ref[...]).astype(compute_dtype)
    # Contract dim 1 of (x*scale) with dim 1 of B (no in-kernel transpose).
    u_ref[...] += lax.dot_general(
        xs, b_ref[...], (((1,), (1,)), ((), ())),
        precision=precision, preferred_element_type=jnp.float32)


# --------------------------------------------------------------------------
# Pass C: out = (x * scale) @ W.T + u @ A.T + bias
# Grid: (batch tiles, d_out tiles, d_in tiles) with d_in trailing reduction.
# --------------------------------------------------------------------------
def _dora_matmul_kernel(x_ref, scale_ref, u_ref, w_ref, a_ref, bias_ref,
                        o_ref, acc_ref, *, compute_dtype, precision):
    k = pl.program_id(2)

    @pl.when(k == 0)
    def _init():
        acc_ref[...] = jnp.zeros_like(acc_ref)

    # Fold m / column_norm into x: batch*d_in VPU work, not d_out*d_in.
    xs = (x_ref[...].astype(jnp.float32) * scale_ref[...]).astype(compute_dtype)
    acc_ref[...] += lax.dot_general(
        xs, w_ref[...], (((1,), (1,)), ((), ())),
        precision=precision, preferred_element_type=jnp.float32)

    @pl.when(k == pl.num_programs(2) - 1)
    def _finalize():
        low = lax.dot_general(
            u_ref[...].astype(compute_dtype), a_ref[...],
            (((1,), (1,)), ((), ())),
            precision=precision, preferred_element_type=jnp.float32)
        o_ref[...] = (acc_ref[...] + low + bias_ref[...]).astype(o_ref.dtype)


# --------------------------------------------------------------------------
# Wrappers
# --------------------------------------------------------------------------
def dora_precompute(weight, lora_A, lora_B, m, bias, *,
                    compute_dtype=jnp.bfloat16,
                    d_in_tile=512, d_out_tile=512,
                    vmem_limit_bytes=48 * 1024 * 1024):
    """Pad/cast the static parameters and run Pass A once.

    weight:(d_out,d_in) lora_A:(d_out,r) lora_B:(r,d_in) m:(1,d_in)/( d_in,)
    bias:(d_out,).  Returns a params dict consumed by dora_apply.
    """
    d_out, d_in = weight.shape
    r = lora_A.shape[1]
    f32 = jnp.float32
    precision = (lax.Precision.HIGHEST
                 if np.dtype(compute_dtype) == np.dtype(np.float32) else None)

    # bf16 packs two rows per sublane -> pad the LoRA rank to a multiple of 16.
    r_pad = max(16, _round_up(r, 16))

    tk, d_in_p = _tile_and_pad(d_in, d_in_tile, 128)    # d_in (lane/reduction)
    tn, d_out_p = _tile_and_pad(d_out, d_out_tile, 128)  # d_out (output lanes)

    # Padding rules (all padding is sliced off / contributes zero):
    #  - d_out pad rows of W/A and bias -> 0.
    #  - d_in pad cols of W -> 1.0 (keeps the padded column norm finite) while
    #    m's pad cols -> 0, so the padded scale is exactly 0 (no inf/NaN).
    w_p = jnp.pad(weight.astype(f32), ((0, d_out_p - d_out), (0, 0)))
    w_p = jnp.pad(w_p, ((0, 0), (0, d_in_p - d_in)), constant_values=1.0)
    a_p = jnp.pad(lora_A.astype(f32), ((0, d_out_p - d_out), (0, r_pad - r)))
    b_p = jnp.pad(lora_B.astype(f32), ((0, r_pad - r), (0, d_in_p - d_in)))
    m_p = jnp.pad(m.reshape(1, d_in).astype(f32), ((0, 0), (0, d_in_p - d_in)))
    bias_p = jnp.pad(bias.reshape(1, d_out).astype(f32),
                     ((0, 0), (0, d_out_p - d_out)))

    # One-time HBM cast to the MXU-native dtype (halves W DMA bytes for bf16).
    w_c = w_p.astype(compute_dtype)
    a_c = a_p.astype(compute_dtype)
    b_c = b_p.astype(compute_dtype)

    scale = pl.pallas_call(
        functools.partial(_col_scale_kernel, precision=precision),
        out_shape=jax.ShapeDtypeStruct((1, d_in_p), f32),
        grid_spec=pltpu.PrefetchScalarGridSpec(
            num_scalar_prefetch=0,
            grid=(d_in_p // tk, d_out_p // tn),
            in_specs=[
                pl.BlockSpec((tn, tk), lambda i, j: (j, i)),       # W
                pl.BlockSpec((tn, r_pad), lambda i, j: (j, 0)),    # A
                pl.BlockSpec((r_pad, tk), lambda i, j: (0, i)),    # B
                pl.BlockSpec((1, tk), lambda i, j: (0, i)),        # m
            ],
            out_specs=pl.BlockSpec((1, tk), lambda i, j: (0, i)),
            scratch_shapes=[pltpu.VMEM((8, tk), f32)],
        ),
        compiler_params=pltpu.CompilerParams(
            dimension_semantics=("parallel", "arbitrary"),
            vmem_limit_bytes=vmem_limit_bytes),
    )(w_c, a_c, b_c, m_p)

    return dict(weight=w_c, lora_A=a_c, lora_B=b_c, bias=bias_p, scale=scale,
                d_in=d_in, d_out=d_out, d_in_p=d_in_p, d_out_p=d_out_p,
                r_pad=r_pad, tk=tk, tn=tn, compute_dtype=compute_dtype,
                precision=precision, vmem_limit_bytes=vmem_limit_bytes)


def dora_apply(x, params, *, batch_tile=512):
    """out = x @ calc_weights.T + bias using precomputed params (Pass B + C)."""
    f32 = jnp.float32
    compute_dtype = params["compute_dtype"]
    precision = params["precision"]
    d_in, d_out = params["d_in"], params["d_out"]
    d_in_p, d_out_p = params["d_in_p"], params["d_out_p"]
    r_pad, tk, tn = params["r_pad"], params["tk"], params["tn"]
    vmem = params["vmem_limit_bytes"]
    scale, w_c, a_c, b_c, bias_p = (params["scale"], params["weight"],
                                    params["lora_A"], params["lora_B"],
                                    params["bias"])

    batch = x.shape[0]
    out_dtype = x.dtype
    tb, batch_p = _tile_and_pad(batch, batch_tile, 8)
    x_p = jnp.pad(x.astype(compute_dtype),
                  ((0, batch_p - batch), (0, d_in_p - d_in)))

    # ----- Pass B: u = (x*scale) @ B.T, once per batch tile ------------------
    u = pl.pallas_call(
        functools.partial(_lora_proj_kernel, compute_dtype=compute_dtype,
                          precision=precision),
        out_shape=jax.ShapeDtypeStruct((batch_p, r_pad), f32),
        grid_spec=pltpu.PrefetchScalarGridSpec(
            num_scalar_prefetch=0,
            grid=(batch_p // tb, d_in_p // tk),
            in_specs=[
                pl.BlockSpec((tb, tk), lambda b, k: (b, k)),       # x
                pl.BlockSpec((1, tk), lambda b, k: (0, k)),        # scale
                pl.BlockSpec((r_pad, tk), lambda b, k: (0, k)),    # B
            ],
            out_specs=pl.BlockSpec((tb, r_pad), lambda b, k: (b, 0)),
        ),
        compiler_params=pltpu.CompilerParams(
            dimension_semantics=("parallel", "arbitrary"),
            vmem_limit_bytes=vmem),
    )(x_p, scale, b_c)

    # ----- Pass C: out = (x*scale) @ W.T + u @ A.T + bias --------------------
    out = pl.pallas_call(
        functools.partial(_dora_matmul_kernel, compute_dtype=compute_dtype,
                          precision=precision),
        out_shape=jax.ShapeDtypeStruct((batch_p, d_out_p), out_dtype),
        grid_spec=pltpu.PrefetchScalarGridSpec(
            num_scalar_prefetch=0,
            grid=(batch_p // tb, d_out_p // tn, d_in_p // tk),
            in_specs=[
                pl.BlockSpec((tb, tk), lambda b, n, k: (b, k)),      # x
                pl.BlockSpec((1, tk), lambda b, n, k: (0, k)),       # scale
                pl.BlockSpec((tb, r_pad), lambda b, n, k: (b, 0)),   # u
                pl.BlockSpec((tn, tk), lambda b, n, k: (n, k)),      # W
                pl.BlockSpec((tn, r_pad), lambda b, n, k: (n, 0)),   # A
                pl.BlockSpec((1, tn), lambda b, n, k: (0, n)),       # bias
            ],
            out_specs=pl.BlockSpec((tb, tn), lambda b, n, k: (b, n)),
            scratch_shapes=[pltpu.VMEM((tb, tn), f32)],
        ),
        compiler_params=pltpu.CompilerParams(
            dimension_semantics=("parallel", "parallel", "arbitrary"),
            vmem_limit_bytes=vmem),
    )(x_p, scale, u, w_c, a_c, bias_p)

    return out[:batch, :d_out]


def dora_forward(x, weight, lora_A, lora_B, m, bias, *,
                 compute_dtype=jnp.bfloat16,
                 d_in_tile=512, d_out_tile=512, batch_tile=512,
                 vmem_limit_bytes=48 * 1024 * 1024):
    """Full DoRA forward.  x:(B,d_in) -> (B,d_out).

    Tile notes: 512-class tiles fit comfortably in every generation's VMEM
    (v7x has 64 MiB/TC -> keep vmem_limit_bytes <= ~48 MiB); raise tk/tn to
    1024/512 on v6e/v5e (128 MiB VMEM) if desired.  Batch/d_out axes are
    'parallel' so v7x's two TensorCores can shard them; d_in is 'arbitrary'.
    """
    params = dora_precompute(weight, lora_A, lora_B, m, bias,
                             compute_dtype=compute_dtype,
                             d_in_tile=d_in_tile, d_out_tile=d_out_tile,
                             vmem_limit_bytes=vmem_limit_bytes)
    return dora_apply(x, params, batch_tile=batch_tile)


def dora_reference(x, weight, lora_A, lora_B, m, bias, precision=None):
    lora = jnp.matmul(lora_A, lora_B, precision=precision)
    adapted = weight + lora
    col_norm = jnp.linalg.norm(adapted, axis=0, keepdims=True)
    calc_w = m.reshape(1, -1) * (adapted / col_norm)
    return jnp.matmul(x, calc_w.T, precision=precision) + bias


if __name__ == "__main__":
    # Small shapes chosen to exercise multi-step reductions and the padding
    # paths (d_in=320 -> padded to 384 with 128-tiles, d_out=448 -> 512).
    batch, d_in, d_out, rank = 8, 320, 448, 4

    key = jax.random.PRNGKey(0)
    k_x, k_w, k_b, k_a, k_lb = jax.random.split(key, 5)

    x = jax.random.normal(k_x, (batch, d_in), dtype=jnp.float32)
    weight = jax.random.normal(k_w, (d_out, d_in), dtype=jnp.float32)
    bias = jax.random.normal(k_b, (d_out,), dtype=jnp.float32)

    # m = weight.norm(p=2, dim=0, keepdim=True) -> (1, d_in), as in __init__.
    m = jnp.linalg.norm(weight, axis=0, keepdims=True)
    std_dev = 1.0 / jnp.sqrt(jnp.float32(rank))
    lora_A = jax.random.normal(k_a, (d_out, rank), dtype=jnp.float32) * std_dev
    # Non-zero lora_B (as after training) so the low-rank path is exercised.
    lora_B = 0.1 * jax.random.normal(k_lb, (rank, d_in), dtype=jnp.float32)

    # --- high-precision f32 path: tight check vs the f32 reference ----------
    out_f32 = dora_forward(x, weight, lora_A, lora_B, m, bias,
                           compute_dtype=jnp.float32,
                           d_in_tile=128, d_out_tile=128)
    jax.block_until_ready(out_f32)
    ref = dora_reference(x, weight, lora_A, lora_B, m, bias,
                         precision=lax.Precision.HIGHEST)
    assert out_f32.shape == (batch, d_out)
    assert jnp.allclose(out_f32, ref, atol=2e-3, rtol=2e-3), float(
        jnp.max(jnp.abs(out_f32 - ref)))

    # --- default bf16 path: check vs a bf16-rounded-input reference ---------
    out_bf16 = dora_forward(x, weight, lora_A, lora_B, m, bias,
                            d_in_tile=128, d_out_tile=128)
    jax.block_until_ready(out_bf16)
    bf = lambda a: a.astype(jnp.bfloat16).astype(jnp.float32)
    ref_bf = dora_reference(bf(x), bf(weight), bf(lora_A), bf(lora_B), m, bias,
                            precision=lax.Precision.HIGHEST)
    assert out_bf16.shape == (batch, d_out)
    assert jnp.allclose(out_bf16, ref_bf, atol=5e-1, rtol=2e-2), float(
        jnp.max(jnp.abs(out_bf16 - ref_bf)))

    print("KERNEL_OK")
</pallas_src>

<mosaic_0001>
module attributes {stable_mosaic.version = 11 : i64} {
  func.func @_col_scale_kernel(%arg0: i32, %arg1: i32, %arg2: memref<128x128xf32, #tpu.memory_space<vmem>>, %arg3: memref<128x16xf32, #tpu.memory_space<vmem>>, %arg4: memref<16x128xf32, #tpu.memory_space<vmem>>, %arg5: memref<1x128xf32, #tpu.memory_space<vmem>>, %arg6: memref<1x128xf32, #tpu.memory_space<vmem>>, %arg7: memref<8x128xf32, #tpu.memory_space<vmem>>) attributes {dimension_semantics = [#tpu.dimension_semantics<parallel>, #tpu.dimension_semantics<arbitrary>], iteration_bounds = array<i64: 3, 4>, scalar_prefetch = 0 : i64, scratch_operands = 1 : i64, tpu.core_type = #tpu.core_type<tc>, window_params = [{transform_indices = @transform_0, window_bounds = array<i64: 128, 128>}, {transform_indices = @transform_1, window_bounds = array<i64: 128, 16>}, {transform_indices = @transform_2, window_bounds = array<i64: 16, 128>}, {transform_indices = @transform_3, window_bounds = array<i64: 1, 128>}, {transform_indices = @transform_4, window_bounds = array<i64: 1, 128>}]} {
    %c0_i32 = arith.constant 0 : i32
    %0 = arith.cmpi eq, %arg1, %c0_i32 : i32
    %1 = arith.extui %0 : i1 to i32
    %c0_i32_0 = arith.constant 0 : i32
    %2 = arith.cmpi ne, %1, %c0_i32_0 : i32
    scf.if %2 {
      %cst_11 = arith.constant 0.000000e+00 : f32
      %46 = vector.broadcast %cst_11 : f32 to vector<8x128xf32>
      %c0_12 = arith.constant 0 : index
      %c0_13 = arith.constant 0 : index
      %47 = vector.load %arg7[%c0_12, %c0_13] : memref<8x128xf32, #tpu.memory_space<vmem>>, vector<8x128xf32>
      tpu.vector_store %arg7[%c0_12, %c0_13], %46 {strides = array<i32>} : memref<8x128xf32, #tpu.memory_space<vmem>>, vector<8x128xf32>,
    } else {
    }
    %c0 = arith.constant 0 : index
    %c0_1 = arith.constant 0 : index
    %3 = vector.load %arg3[%c0, %c0_1] : memref<128x16xf32, #tpu.memory_space<vmem>>, vector<128x16xf32>
    %c0_2 = arith.constant 0 : index
    %c0_3 = arith.constant 0 : index
    %4 = vector.load %arg4[%c0_2, %c0_3] : memref<16x128xf32, #tpu.memory_space<vmem>>, vector<16x128xf32>
    %cst = arith.constant dense<0.000000e+00> : vector<128x128xf32>
    %5 = tpu.matmul %3, %4, %cst {dimension_numbers = #tpu.dot_dimension_numbers<[1], [0], [0], [1], [0, 0, 1, 1], [], []>, precision = #tpu.contract_precision<fp32>} : vector<128x16xf32>, vector<16x128xf32>, vector<128x128xf32> -> vector<128x128xf32>
    %c0_4 = arith.constant 0 : index
    %c0_5 = arith.constant 0 : index
    %6 = vector.load %arg2[%c0_4, %c0_5] : memref<128x128xf32, #tpu.memory_space<vmem>>, vector<128x128xf32>
    %7 = arith.addf %6, %5 : vector<128x128xf32>
    %8 = arith.mulf %7, %7 : vector<128x128xf32>
    %9 = vector.extract_strided_slice %8 {offsets = [0, 0], sizes = [8, 128], strides = [1, 1]} : vector<128x128xf32> to vector<8x128xf32>
    %10 = vector.extract_strided_slice %8 {offsets = [8, 0], sizes = [8, 128], strides = [1, 1]} : vector<128x128xf32> to vector<8x128xf32>
    %11 = arith.addf %9, %10 : vector<8x128xf32>
    %12 = vector.extract_strided_slice %8 {offsets = [16, 0], sizes = [8, 128], strides = [1, 1]} : vector<128x128xf32> to vector<8x128xf32>
    %13 = arith.addf %11, %12 : vector<8x128xf32>
    %14 = vector.extract_strided_slice %8 {offsets = [24, 0], sizes = [8, 128], strides = [1, 1]} : vector<128x128xf32> to vector<8x128xf32>
    %15 = arith.addf %13, %14 : vector<8x128xf32>
    %16 = vector.extract_strided_slice %8 {offsets = [32, 0], sizes = [8, 128], strides = [1, 1]} : vector<128x128xf32> to vector<8x128xf32>
    %17 = arith.addf %15, %16 : vector<8x128xf32>
    %18 = vector.extract_strided_slice %8 {offsets = [40, 0], sizes = [8, 128], strides = [1, 1]} : vector<128x128xf32> to vector<8x128xf32>
    %19 = arith.addf %17, %18 : vector<8x128xf32>
    %20 = vector.extract_strided_slice %8 {offsets = [48, 0], sizes = [8, 128], strides = [1, 1]} : vector<128x128xf32> to vector<8x128xf32>
    %21 = arith.addf %19, %20 : vector<8x128xf32>
    %22 = vector.extract_strided_slice %8 {offsets = [56, 0], sizes = [8, 128], strides = [1, 1]} : vector<128x128xf32> to vector<8x128xf32>
    %23 = arith.addf %21, %22 : vector<8x128xf32>
    %24 = vector.extract_strided_slice %8 {offsets = [64, 0], sizes = [8, 128], strides = [1, 1]} : vector<128x128xf32> to vector<8x128xf32>
    %25 = arith.addf %23, %24 : vector<8x128xf32>
    %26 = vector.extract_strided_slice %8 {offsets = [72, 0], sizes = [8, 128], strides = [1, 1]} : vector<128x128xf32> to vector<8x128xf32>
    %27 = arith.addf %25, %26 : vector<8x128xf32>
    %28 = vector.extract_strided_slice %8 {offsets = [80, 0], sizes = [8, 128], strides = [1, 1]} : vector<128x128xf32> to vector<8x128xf32>
    %29 = arith.addf %27, %28 : vector<8x128xf32>
    %30 = vector.extract_strided_slice %8 {offsets = [88, 0], sizes = [8, 128], strides = [1, 1]} : vector<128x128xf32> to vector<8x128xf32>
    %31 = arith.addf %29, %30 : vector<8x128xf32>
    %32 = vector.extract_strided_slice %8 {offsets = [96, 0], sizes = [8, 128], strides = [1, 1]} : vector<128x128xf32> to vector<8x128xf32>
    %33 = arith.addf %31, %32 : vector<8x128xf32>
    %34 = vector.extract_strided_slice %8 {offsets = [104, 0], sizes = [8, 128], strides = [1, 1]} : vector<128x128xf32> to vector<8x128xf32>
    %35 = arith.addf %33, %34 : vector<8x128xf32>
    %36 = vector.extract_strided_slice %8 {offsets = [112, 0], sizes = [8, 128], strides = [1, 1]} : vector<128x128xf32> to vector<8x128xf32>
    %37 = arith.addf %35, %36 : vector<8x128xf32>
    %38 = vector.extract_strided_slice %8 {offsets = [120, 0], sizes = [8, 128], strides = [1, 1]} : vector<128x128xf32> to vector<8x128xf32>
    %39 = arith.addf %37, %38 : vector<8x128xf32>
    %c0_6 = arith.constant 0 : index
    %c0_7 = arith.constant 0 : index
    %40 = vector.load %arg7[%c0_6, %c0_7] : memref<8x128xf32, #tpu.memory_space<vmem>>, vector<8x128xf32>
    %41 = arith.addf %40, %39 : vector<8x128xf32>
    %c0_8 = arith.constant 0 : index
    %c0_9 = arith.constant 0 : index
    %42 = vector.load %arg7[%c0_8, %c0_9] : memref<8x128xf32, #tpu.memory_space<vmem>>, vector<8x128xf32>
    tpu.vector_store %arg7[%c0_8, %c0_9], %41 {strides = array<i32>} : memref<8x128xf32, #tpu.memory_space<vmem>>, vector<8x128xf32>,
    %c3_i32 = arith.constant 3 : i32
    %43 = arith.cmpi eq, %arg1, %c3_i32 : i32
    %44 = arith.extui %43 : i1 to i32
    %c0_i32_10 = arith.constant 0 : i32
    %45 = arith.cmpi ne, %44, %c0_i32_10 : i32
    scf.if %45 {
      %c0_11 = arith.constant 0 : index
      %c0_12 = arith.constant 0 : index
      %46 = vector.load %arg7[%c0_11, %c0_12] : memref<8x128xf32, #tpu.memory_space<vmem>>, vector<8x128xf32>
      %cst_13 = arith.constant dense<0.000000e+00> : vector<128xf32>
      %47 = vector.multi_reduction <add>, %46, %cst_13 [0] : vector<8x128xf32> to vector<128xf32>
      %48 = vector.shape_cast %47 : vector<128xf32> to vector<1x128xf32>
      %c0_14 = arith.constant 0 : index
      %c0_15 = arith.constant 0 : index
      %49 = vector.load %arg5[%c0_14, %c0_15] : memref<1x128xf32, #tpu.memory_space<vmem>>, vector<1x128xf32>
      %50 = math.rsqrt %48 : vector<1x128xf32>
      %51 = arith.mulf %49, %50 : vector<1x128xf32>
      %c0_16 = arith.constant 0 : index
      %c0_17 = arith.constant 0 : index
      %52 = vector.load %arg6[%c0_16, %c0_17] : memref<1x128xf32, #tpu.memory_space<vmem>>, vector<1x128xf32>
      tpu.vector_store %arg6[%c0_16, %c0_17], %51 {strides = array<i32>} : memref<1x128xf32, #tpu.memory_space<vmem>>, vector<1x128xf32>,
    } else {
    }
    return
  }
  func.func @transform_0(%arg0: i32, %arg1: i32) -> (i32, i32) {
    %c0_i32 = arith.constant 0 : i32
    return %arg1, %arg0 : i32, i32
  }
  func.func @transform_1(%arg0: i32, %arg1: i32) -> (i32, i32) {
    %c0_i32 = arith.constant 0 : i32
    %c0_i32_0 = arith.constant 0 : i32
    return %arg1, %c0_i32 : i32, i32
  }
  func.func @transform_2(%arg0: i32, %arg1: i32) -> (i32, i32) {
    %c0_i32 = arith.constant 0 : i32
    %c0_i32_0 = arith.constant 0 : i32
    return %c0_i32, %arg0 : i32, i32
  }
  func.func @transform_3(%arg0: i32, %arg1: i32) -> (i32, i32) {
    %c0_i32 = arith.constant 0 : i32
    %c0_i32_0 = arith.constant 0 : i32
    return %c0_i32, %arg0 : i32, i32
  }
  func.func @transform_4(%arg0: i32, %arg1: i32) -> (i32, i32) {
    %c0_i32 = arith.constant 0 : i32
    %c0_i32_0 = arith.constant 0 : i32
    return %c0_i32, %arg0 : i32, i32
  }
}

</mosaic_0001>

<bundles_post_ra>
// kernel: tpu_custom_call.1
= control target key start
LH: loop header
LB: loop body
LE: loop exit
PB: predicated region body
PF: predicated region fallthrough
CT: control target
= control target key end

     0   :  { %s2093_s0 = inlined_call_operand.hbm [shape: f32[512,384], index: 0, kind: input, shape index: {}]   ;;  %s2094_s1 = inlined_call_operand.vmem [shape: f32[512,16], index: 1, kind: input, shape index: {}]   ;;  %s2095_s2 = inlined_call_operand.vmem [shape: f32[16,384], index: 2, kind: input, shape index: {}]   ;;  %s2096_s3 = inlined_call_operand.vmem [shape: f32[1,384], index: 3, kind: input, shape index: {}]   ;;  %s2097_s4 = inlined_call_operand.hbm [shape: f32[1,384], index: 4, kind: output, shape index: {}]  }
   0x1   :  { %2105 = sst [smem:[#allocation17_spill]] %s2097_s4 }
   0x2   :  { %9 = vsyncpa [#allocation4], 0 }
   0x3   :  { %11 = vsyncpa [#allocation4 + $0x1], 0 }
   0x4   :  { %12 = vsyncpa [#allocation5], 0 }
   0x5   :  { %14 = vsyncpa [#allocation5 + $0x1], 0  ;;  %s1554_s15 = smov 0   ;;  %s1556_s16 = smov 0  }
   0x6   :  { %s1558_s17 = smov 0   ;;  %s1560_s18 = smov 0  }
   0x7   :  { %s1562_s19 = smov 0   ;;  %s1564_s20 = smov 0  }
   0x8   :  { %s1566_s21 = smov 0   ;;  %s1568_s22 = smov 0  }
   0x9   :  { %s1570_s23 = smov 0   ;;  %s1572_s24 = smov 0  }
   0xa   :  { %s1574_s25 = smov 0  }
   0xb LB: > { %2106 = sst [smem:[#allocation10_spill]] %s1483_s15  ;;  %s1246_s26 = sadd.s32 4294967295, %s1523_s25   ;;  %s1523_s25 = sphi %s1574_s25, %s20_s25   ;;  %s1519_s24 = sphi %s1572_s24, %s2135_s24   ;;  %s1515_s23 = sphi %s1570_s23, %s2134_s23   ;;  %s1511_s22 = sphi %s1568_s22, %s2133_s22   ;;  %s1507_s21 = sphi %s1566_s21, %s2132_s21   ;;  %s1503_s20 = sphi %s1564_s20, %s2131_s20   ;;  %s1499_s19 = sphi %s1562_s19, %s2130_s19   ;;  %s1495_s18 = sphi %s1560_s18, %s2129_s18   ;;  %s1491_s17 = sphi %s1558_s17, %s2128_s17   ;;  %s1487_s16 = sphi %s1556_s16, %s2127_s16   ;;  %s1483_s15 = sphi %s1554_s15, %s2126_s15  }
   0xc   : > { %s1247_s27 = sadd.s32 4294967294, %s1523_s25   ;;  %s29_s28 = sadd.s32 1, %s1515_s23 }
   0xd   : > { %s32_s29 = sadd.s32 1, %s1519_s24  ;;  %p30_p0 = scmp.ge.s32.totalorder %s29_s28, 4 }
   0xe   : > { %s41_s30 = sadd.s32 1, %s1503_s20  ;;  %p48_p1 = scmp.ne.s32.totalorder %s1503_s20, %s1499_s19 }
   0xf   : > { %p49_p2 = scmp.eq.s32.totalorder %s1523_s25, 0  ;;  %s2137_s28 = smov (%p30_p0, %s29_s28), 0 }
  0x10   : > { %2107 = sst [smem:[#allocation11_spill]] %s2137_s28  ;;  %s2139_s29 = smov (!%p30_p0, %s32_s29), %s1519_s24 }
  0x11   : > { %s36_s5 = ssub.s32 %s1515_s23, %s2137_s28  ;;  %p1622_p3 = por %p49_p2, %p48_p1 }
  0x12   : > { %p34_p4 = scmp.ge.s32.totalorder %s2139_s29, 3  ;;  %p54_p5 = scmp.ne.s32.totalorder %s1499_s19, %s1495_s18 }
  0x13   : > { %p55_p6 = scmp.eq.s32.totalorder %s1246_s26, 0  ;;  %s93_s7 = sadd.s32 1, %s1491_s17 }
  0x14   : > { %s2141_s29 = smov (%p34_p4, %s2139_s29), 0  ;;  %p100_p8 = scmp.ne.s32.totalorder %s1491_s17, %s1487_s16 }
  0x15   : > { %2109 = sst [smem:[#allocation12_spill]] %s2141_s29  ;;  %p1630_p7 = por %p55_p6, %p54_p5 }
  0x16   : > { %s37_s9 = ssub.s32 %s1519_s24, %s2141_s29  ;;  %p156_p9 = scmp.eq.s32.totalorder %s1246_s26, 11 }
  0x17   : > { %s38_s10 = sor.u32 %s37_s9, %s36_s5  ;;  %p91_p10 = scmp.eq.s32.totalorder %s37_s9, 0 }
  0x18   : > { %p39_p11 = scmp.eq.s32.totalorder %s38_s10, 0  ;;  %p1640_p12 = por %p100_p8, %p49_p2 }
  0x19   : > { %s1645_s12 = scalar_select %p91_p10, %s1491_s17, %s93_s7  }
  0x1a   : > { %s1648_s13 = scalar_select %p39_p11, %s1503_s20, %s41_s30  }
  0x1b   : > { %2112 = sst [smem:[#allocation13_spill]] %s1645_s12  ;;  %p1650_p13 = por %p156_p9, %p100_p8 }
  0x1c   : > { %2113 = sst [smem:[#allocation14_spill]] %s1648_s13  ;;  %p161_p0 = scmp.ne.s32.totalorder %s1487_s16, %s1483_s15 }
  0x1d   : > { %s2114_s14 = scalar_select %p1650_p13, 1, 0 }
  0x1e   : > { %p162_p1 = scmp.eq.s32.totalorder %s1247_s27, 11  ;;  %p1249_p5 = scmp.ge.s32.totalorder %s1523_s25, 12 }
  0x1f   : > { %2115 = sst [smem:[#allocation15_spill]] %s2114_s14  ;;  %s182_s26 = sand.u32 (!%p1249_p5), 1, %s1503_s20  }
  0x20   : > { %p1656_p4 = por %p162_p1, %p161_p0  ;;  %178 = sbr.rel (%p1249_p5) target bundleno = 47 (0x2f), region = 16 }
  0x21   : > { %s1269_s30 = smul.u32 (!%p1249_p5), 48, %s1515_s23  ;;  %s1250_s5 = sshll.u32 (!%p1249_p5), %s182_s26, 7 }
  0x22   : > { %s2116_s18 = scalar_select %p1656_p4, 1, 0 }
  0x23   : > { %s191_s7 = sadd.s32 (!%p1249_p5), %s1519_s24, %s1269_s30  ;;  %s186_s10 = scalar_lea.vmem (!%p1249_p5), [#allocation3], %s1250_s5 }
  0x24   : > { %2117 = sst [smem:[#allocation16_spill]] %s2116_s18  ;;  %s1253_s9 = sshll.u32 (!%p1249_p5), %s191_s7, 3 }
  0x25   : > { %s196_s29 = sshll.u32 %s186_s10, 4  ;;  %s193_s13 = scalar_lea.hbm %s2093_s0, %s1253_s9  ;;  %s197_s29 = int_to_ptr.vmem [resolvable:$true] %s196_s29 }
  0x26   : > { %s194_s12 = sshll.u32 %s193_s13, 4  ;;  %s183_s18 = scalar_lea.sflag [#allocation4], %s182_s26  ;;  %s195_s12 = int_to_ptr.hbm [resolvable:$true] %s194_s12 }
  0x27   : > { %s1525_s15 = smov 384   ;;  %s1526_s14 = smov 128  }
  0x28   : > { %s1527_s4 = smov 8   ;;  %214 = sbr.rel (!%p1640_p12) target bundleno = 47 (0x2f), region = 28 }
  0x29   : > { %1270 = dma.hbm_to_vmem [thread:$0]  (%p1622_p3), %s195_s12, 2048, %s197_s29, %s183_s18, %s1525_s15, %s1526_s14, %s1527_s4  }
  0x2a   : > { %s216_s30 = sand.u32 (%p1640_p12), 1, %s1491_s17   ;;  %s1255_s5 = sshll.u32 (%p1640_p12), %s1519_s24, 3 }
  0x2b   : > { %s1254_s7 = sshll.u32 (%p1640_p12), %s216_s30, 4  ;;  %s220_s9 = scalar_lea.vmem (%p1640_p12), %s2095_s2, %s1255_s5 }
  0x2c   : > { %v251_v0 = vld [vmem:[%s220_s9] sm:$0xff] (%p1640_p12)  ;;  %v253_v1 = vld [vmem:[%s220_s9 + $0x18] sm:$0xff] (%p1640_p12)  ;;  %s218_s13 = scalar_lea.vmem (%p1640_p12), [#allocation6], %s1254_s7 }
  0x2d   : > { %252 = vst [vmem:[%s218_s13] sm:$0xff] %v251_v0 }
  0x2e   : > { %254 = vst [vmem:[%s218_s13 + $0x8] sm:$0xff] %v253_v1 }
  0x2f PF: > { %p1256_p2 = scmp.ge.s32.totalorder %s1523_s25, 1  ;;  %p265_p3 = scmp.lt.s32.totalorder %s1523_s25, 13 }
  0x31   : > { %p266_p6 = pnand %p1256_p2, %p265_p3 }
  0x32   : > { %s271_s4 = sand.u32 (!%p266_p6), 1, %s1499_s19  }
  0x33   : > { %269 = sbr.rel (%p266_p6) target bundleno = 477 (0x1dd), region = 70  ;;  %s1257_s15 = sshll.u32 (!%p266_p6), %s271_s4, 7 }
  0x34   : > { %s272_s29 = scalar_lea.sflag (!%p266_p6), [#allocation4], %s271_s4  ;;  %s1679_s6 = scalar_lea.vmem (!%p266_p6), [#allocation3], %s1257_s15 }
  0x38   : > { %1474 = dma.done.wait (%p1630_p7), %s272_s29, 2048  }
  0x39   : > { %1476 = vsyncadd (%p1630_p7), %s272_s29, 4294965248  ;;  %s1686_s11 = sand.u32 1, %s1487_s16   ;;  %s1259_s12 = sshll.u32 %s1507_s21, 4 }
  0x3a   : > { %s1258_s14 = sshll.u32 %s1686_s11, 4  ;;  %p321_p8 = scmp.lt.s32.totalorder %s1259_s12, 63 }
  0x3b   : > { %p326_p9 = scmp.lt.s32.totalorder %s1511_s22, 2  ;;  %s284_s28 = scalar_lea.vmem [#allocation6], %s1258_s14 }
  0x3c   : > { %s2143_s12 = smov (!%p321_p8, %s1259_s12), 63  ;;  %s318_s9 = scalar_lea.vmem [#allocation7], %s1686_s11 }
  0x3d   : > { %s1692_s18 = scalar_select %p326_p9, %s1511_s22, 2 }
  0x3e   : > { %s1260_s26 = sshll.u32 %s2143_s12, 3  ;;  %p1261_p7 = scmp.ne.s32.totalorder %s1507_s21, 0 }
  0x3f   : > { %s1697_s30 = scalar_lea.vmem %s2094_s1, %s1260_s26  ;;  %s328_s10 = scalar_lea.vmem %s2096_s3, %s1692_s18 }
  0x40   : > { %332 = sbr.rel (%p1261_p7) target bundleno = 71 (0x47), region = 82 }
  0x45   : > { %v1528_v2 = vmov 0.0  }
  0x46   : > { %333 = vst [vmem:[#allocation2] sm:$0xff] %v1528_v2 }
  0x47 PF: > { %v351_v3 = vld [vmem:[%s284_s28 + $0x8] sm:$0xff]  ;;  %v350_v4 = vld [vmem:[%s284_s28] sm:$0xff]  ;;  %vm352_vm0 = vcmask 130048   ;;  %p1262_p10 = scmp.ne.s32.totalorder %s1507_s21, 3 }
  0x48   : > { %v342_v5 = vld [vmem:[%s1697_s30 + $0x40] sm:$0xff]  ;;  %v1706_v6 = vand.u32 4294901760, %v351_v3  ;;  %v1708_v7 = vand.u32 4294901760, %v350_v4  ;;  %v343_v9 = vld [vmem:[%s1697_s30 + $0x48] sm:$0xff]  ;;  %v344_v11 = vld [vmem:[%s1697_s30 + $0x50] sm:$0xff] }
  0x49   : > { %v378_v8 = vsel %vm352_vm0, %v342_v5, 0  ;;  %v334_v10 = vld [vmem:[%s1697_s30] sm:$0xff]  ;;  %v381_v13 = vsel %vm352_vm0, %v343_v9, 0  ;;  %v335_v15 = vld [vmem:[%s1697_s30 + $0x8] sm:$0xff]  ;;  %v384_v21 = vsel %vm352_vm0, %v344_v11, 0  ;;  %v336_v36 = vld [vmem:[%s1697_s30 + $0x10] sm:$0xff] }
  0x4a   : > { %v1714_v12 = vand.u32 4294901760, %v378_v8  ;;  %v354_v14 = vsel %vm352_vm0, %v334_v10, 0  ;;  %1265 = vmatpush.msra.mxu2 %v1706_v6  ;;  %v563_v16 = vsub.f32 %v351_v3, %v1706_v6  ;;  %v569_v17 = vsub.f32 %v350_v4, %v1708_v7  ;;  %416 = vmatpush.msra.mxu0 %v1706_v6  ;;  %v345_v42 = vld [vmem:[%s1697_s30 + $0x58] sm:$0xff]  ;;  %v346_v58 = vld [vmem:[%s1697_s30 + $0x60] sm:$0xff] }
  0x4b   : > { %v1723_v18 = vand.u32 4294901760, %v381_v13  ;;  %v1725_v19 = vand.u32 4294901760, %v354_v14  ;;  %v357_v22 = vsel %vm352_vm0, %v335_v15, 0  ;;  %v1748_v34 = vand.u32 4294901760, %v384_v21  ;;  %v337_v48 = vld [vmem:[%s1697_s30 + $0x18] sm:$0xff]  ;;  %v338_v62 = vld [vmem:[%s1697_s30 + $0x20] sm:$0xff] }
  0x4c   : > { %v1728_v20 = vsub.f32 %v378_v8, %v1714_v12  ;;  %1266 = vmatpush.msra.mxu2 %v1708_v7  ;;  %v564_v23 = vand.u32 4294901760, %v563_v16  ;;  %v570_v24 = vand.u32 4294901760, %v569_v17  ;;  %418 = vmatpush.msra.mxu0 %v1708_v7  ;;  %v1741_v28 = vand.u32 4294901760, %v357_v22  ;;  %v347_v8 = vld [vmem:[%s1697_s30 + $0x68] sm:$0xff] }
  0x4d   : > { %v1734_v25 = vsub.f32 %v381_v13, %v1723_v18  ;;  %v1738_v26 = vsub.f32 %v354_v14, %v1725_v19  ;;  %v360_v44 = vsel %vm352_vm0, %v336_v36, 0  ;;  %v1764_v46 = vsub.f32 %v384_v21, %v1748_v34  ;;  %v339_v13 = vld [vmem:[%s1697_s30 + $0x28] sm:$0xff] }
  0x4e   : > { %v485_v27 = vand.u32 4294901760, %v1728_v20  ;;  %655 = vmatpush.msrb.mxu2 %v563_v16  ;;  %v565_v29 = vsub.f32 %v563_v16, %v564_v23  ;;  %v571_v30 = vsub.f32 %v569_v17, %v570_v24  ;;  %872 = vmatpush.msrb.mxu0 %v564_v23  ;;  %v1751_v35 = vsub.f32 %v357_v22, %v1741_v28 }
  0x4f   : > { %v421_v31 = vand.u32 4294901760, %v1738_v26  ;;  %v493_v33 = vand.u32 4294901760, %v1734_v25  ;;  %v1766_v47 = vand.u32 4294901760, %v360_v44  ;;  %v387_v49 = vsel %vm352_vm0, %v345_v42, 0 }
  0x50   : > { %v486_v32 = vsub.f32 %v1728_v20, %v485_v27  ;;  %658 = vmatpush.msrb.mxu2 %v569_v17  ;;  %v566_v37 = vand.u32 4294901760, %v565_v29  ;;  %v572_v38 = vand.u32 4294901760, %v571_v30  ;;  %876 = vmatpush.msrb.mxu0 %v570_v24  ;;  %v429_v41 = vand.u32 4294901760, %v1751_v35  ;;  %v348_v30 = vld [vmem:[%s1697_s30 + $0x70] sm:$0xff] }
  0x51   : > { %v422_v39 = vsub.f32 %v1738_v26, %v421_v31  ;;  %v494_v45 = vsub.f32 %v1734_v25, %v493_v33  ;;  %v1775_v51 = vsub.f32 %v360_v44, %v1766_v47  ;;  %v363_v52 = vsel %vm352_vm0, %v337_v48, 0 }
  0x52   : > { %v487_v40 = vand.u32 4294901760, %v486_v32  ;;  %1267 = vmatpush.msra.mxu3 %v566_v37  ;;  %567 = vmatpush.msra.mxu1 %v566_v37  ;;  %v430_v50 = vsub.f32 %v1751_v35, %v429_v41  ;;  %v501_v54 = vand.u32 4294901760, %v1764_v46  ;;  %v1782_v55 = vand.u32 4294901760, %v387_v49 }
  0x53   : > { %v423_v43 = vand.u32 4294901760, %v422_v39  ;;  %v495_v53 = vand.u32 4294901760, %v494_v45  ;;  %v437_v57 = vand.u32 4294901760, %v1775_v51  ;;  %v1787_v59 = vand.u32 4294901760, %v363_v52 }
  0x54   : > { %488 = vmatmul.f32.vlgmr.msra.gmra.mxu2 %v487_v40  ;;  %1268 = vmatpush.msra.mxu3 %v572_v38  ;;  %v431_v56 = vand.u32 4294901760, %v430_v50  ;;  %v502_v60 = vsub.f32 %v1764_v46, %v501_v54  ;;  %v1794_v61 = vsub.f32 %v387_v49, %v1782_v55  ;;  %v390_v63 = vsel %vm352_vm0, %v346_v58, 0 }
  0x55   : > { %573 = vmatpush.msra.mxu1 %v572_v38  ;;  %607 = vmatmul.f32.vlgmr.msra.gmra.mxu3 %v1714_v12  ;;  %v438_v0 = vsub.f32 %v1775_v51, %v437_v57  ;;  %v1803_v1 = vsub.f32 %v363_v52, %v1787_v59  ;;  %v366_v2 = vsel %vm352_vm0, %v338_v62, 0  ;;  %v1808_v5 = vand.u32 4294901760, %v390_v63  ;;  %v340_v38 = vld [vmem:[%s1697_s30 + $0x30] sm:$0xff]  ;;  %v349_v52 = vld [vmem:[%s1697_s30 + $0x78] sm:$0xff] }
  0x56   : > { %424 = vmatmul.f32.vlgmr.msra.gmra.mxu0 %v423_v43  ;;  %755 = vmatpush.msrb.mxu3 %v1706_v6  ;;  %v503_v3 = vand.u32 4294901760, %v502_v60  ;;  %v509_v4 = vand.u32 4294901760, %v1794_v61  ;;  %v1812_v9 = vand.u32 4294901760, %v366_v2  ;;  %v393_v14 = vsel %vm352_vm0, %v347_v8, 0  ;;  %v341_v60 = vld [vmem:[%s1697_s30 + $0x38] sm:$0xff] }
  0x57   : > { %575 = vmatmul.f32.vlgmr.msra.gmra.mxu1 %v1725_v19  ;;  %v1818_v11 = vsub.f32 %v390_v63, %v1808_v5  ;;  %v369_v17 = vsel %vm352_vm0, %v339_v13, 0  ;;  %v1832_v23 = vand.u32 4294901760, %v393_v14  ;;  %v396_v39 = vsel %vm352_vm0, %v348_v30, 0 }
  0x58   : > { %957 = vmatpush.msrb.mxu1 %v1706_v6  ;;  %757 = vmatpush.msrb.mxu3 %v1708_v7  ;;  %v439_v6 = vand.u32 4294901760, %v438_v0  ;;  %v510_v10 = vsub.f32 %v1794_v61, %v509_v4  ;;  %v1827_v16 = vsub.f32 %v366_v2, %v1812_v9  ;;  %v1836_v32 = vand.u32 4294901760, %v369_v17 }
  0x59   : > { %v517_v22 = vand.u32 4294901760, %v1818_v11  ;;  %v1842_v37 = vsub.f32 %v393_v14, %v1832_v23  ;;  %v372_v43 = vsel %vm352_vm0, %v340_v38, 0  ;;  %v1856_v48 = vand.u32 4294901760, %v396_v39 }
  0x5a   : > { %959 = vmatpush.msrb.mxu1 %v1708_v7  ;;  %v445_v7 = vand.u32 4294901760, %v1803_v1  ;;  %v511_v21 = vand.u32 4294901760, %v510_v10  ;;  %v453_v29 = vand.u32 4294901760, %v1827_v16  ;;  %v1851_v42 = vsub.f32 %v369_v17, %v1836_v32 }
  0x5b   : > { %v518_v36 = vsub.f32 %v1818_v11, %v517_v22  ;;  %v525_v45 = vand.u32 4294901760, %v1842_v37  ;;  %v1866_v58 = vsub.f32 %v396_v39, %v1856_v48  ;;  %v399_v62 = vsel %vm352_vm0, %v349_v52, 0 }
  0x5c   : > { %496 = vmatmul.f32.gmra.mxu2 %v495_v53  ;;  %v446_v15 = vsub.f32 %v1803_v1, %v445_v7  ;;  %v454_v40 = vsub.f32 %v1827_v16, %v453_v29  ;;  %v461_v50 = vand.u32 4294901760, %v1851_v42  ;;  %v1860_v53 = vand.u32 4294901760, %v372_v43 }
  0x5d   : > { %611 = vmatmul.f32.gmra.mxu3 %v1723_v18  ;;  %v519_v44 = vand.u32 4294901760, %v518_v36  ;;  %v375_v2 = vsel %vm352_vm0, %v341_v60, 0  ;;  %v1878_v8 = vand.u32 4294901760, %v399_v62 }
  0x5e   : > { %432 = vmatmul.f32.gmra.mxu0 %v431_v56  ;;  %v447_v24 = vand.u32 4294901760, %v446_v15  ;;  %v455_v49 = vand.u32 4294901760, %v454_v40  ;;  %v526_v56 = vsub.f32 %v1842_v37, %v525_v45  ;;  %v462_v63 = vsub.f32 %v1851_v42, %v461_v50 }
  0x5f   : > { %579 = vmatmul.f32.gmra.mxu1 %v1741_v28  ;;  %v468_v0 = vsub.f32 %v372_v43, %v1860_v53  ;;  %v475_v14 = vand.u32 4294901760, %v375_v2  ;;  %v1884_v17 = vsub.f32 %v399_v62, %v1878_v8 }
  0x60   : > { %v463_v10 = vand.u32 4294901760, %v462_v63 }
  0x61   : > { %v469_v13 = vand.u32 4294901760, %v468_v0  ;;  %v541_v36 = vand.u32 4294901760, %v1884_v17 }
  0x63   : > { %v542_v40 = vsub.f32 %v1884_v17, %v541_v36 }
  0x64   : > { %504 = vmatmul.f32.gmra.mxu2 %v503_v3  ;;  %v527_v3 = vand.u32 4294901760, %v526_v56 }
  0x65   : > { %615 = vmatmul.f32.gmra.mxu3 %v1748_v34 }
  0x66   : > { %440 = vmatmul.f32.gmra.mxu0 %v439_v6  ;;  %v533_v6 = vand.u32 4294901760, %v1866_v58 }
  0x67   : > { %583 = vmatmul.f32.gmra.mxu1 %v1766_v47 }
  0x68   : > { %v534_v15 = vsub.f32 %v1866_v58, %v533_v6 }
  0x6a   : > { %v535_v30 = vand.u32 4294901760, %v534_v15 }
  0x6c   : > { %512 = vmatmul.f32.gmra.mxu2 %v511_v21  ;;  %v470_v21 = vsub.f32 %v468_v0, %v469_v13 }
  0x6d   : > { %619 = vmatmul.f32.gmra.mxu3 %v1782_v55 }
  0x6e   : > { %448 = vmatmul.f32.gmra.mxu0 %v447_v24  ;;  %v476_v24 = vsub.f32 %v375_v2, %v475_v14  ;;  %v471_v38 = vand.u32 4294901760, %v470_v21 }
  0x6f   : > { %587 = vmatmul.f32.gmra.mxu1 %v1787_v59 }
  0x70   : > { %v477_v39 = vand.u32 4294901760, %v476_v24 }
  0x72   : > { %v478_v43 = vsub.f32 %v476_v24, %v477_v39 }
  0x74   : > { %520 = vmatmul.f32.gmra.mxu2 %v519_v44  ;;  %v543_v44 = vand.u32 4294901760, %v542_v40 }
  0x75   : > { %623 = vmatmul.f32.gmra.mxu3 %v1808_v5 }
  0x76   : > { %456 = vmatmul.f32.gmra.mxu0 %v455_v49  ;;  %v479_v49 = vand.u32 4294901760, %v478_v43 }
  0x77   : > { %591 = vmatmul.f32.gmra.mxu1 %v1812_v9 }
  0x7c   : > { %528 = vmatmul.f32.gmra.mxu2 %v527_v3 }
  0x7d   : > { %627 = vmatmul.f32.gmra.mxu3 %v1832_v23 }
  0x7e   : > { %464 = vmatmul.f32.gmra.mxu0 %v463_v10 }
  0x7f   : > { %595 = vmatmul.f32.gmra.mxu1 %v1836_v32 }
  0x84   : > { %536 = vmatmul.f32.gmra.mxu2 %v535_v30 }
  0x85   : > { %631 = vmatmul.f32.gmra.mxu3 %v1856_v48 }
  0x86   : > { %472 = vmatmul.f32.gmra.mxu0 %v471_v38 }
  0x87   : > { %599 = vmatmul.f32.gmra.mxu1 %v1860_v53 }
  0x8c   : > { %544 = vmatmul.f32.gmra.mxu2 %v543_v44  ;;  %v1025_v44 = vld [vmem:[%s1679_s6] sm:$0xff] }
  0x8d   : > { %635 = vmatmul.f32.gmra.mxu3 %v1878_v8 }
  0x8e   : > { %480 = vmatmul.f32.gmra.mxu0 %v479_v49 }
  0x8f   : > { %603 = vmatmul.f32.gmra.mxu1 %v475_v14 }
  0x94   : > { %661 = vmatmul.f32.vlgmr.msrb.gmra.mxu2 %v1738_v26 }
  0x95   : > { %761 = vmatmul.f32.vlgmr.msrb.gmra.mxu3 %v421_v31 }
  0x96   : > { %878 = vmatmul.f32.vlgmr.msrb.gmra.mxu0 %v1725_v19 }
  0x97   : > { %961 = vmatmul.f32.vlgmr.msrb.gmra.mxu1 %v1725_v19 }
  0x9c   : > { %666 = vmatmul.f32.gmra.mxu2 %v1751_v35 }
  0x9d   : > { %767 = vmatmul.f32.gmra.mxu3 %v429_v41 }
  0x9e   : > { %882 = vmatmul.f32.gmra.mxu0 %v1741_v28 }
  0x9f   : > { %965 = vmatmul.f32.gmra.mxu1 %v1741_v28 }
  0xa4   : > { %671 = vmatmul.f32.gmra.mxu2 %v1775_v51 }
  0xa5   : > { %773 = vmatmul.f32.gmra.mxu3 %v437_v57 }
  0xa6   : > { %886 = vmatmul.f32.gmra.mxu0 %v1766_v47 }
  0xa7   : > { %969 = vmatmul.f32.gmra.mxu1 %v1766_v47 }
  0xac   : > { %676 = vmatmul.f32.gmra.mxu2 %v1803_v1 }
  0xad   : > { %779 = vmatmul.f32.gmra.mxu3 %v445_v7 }
  0xae   : > { %890 = vmatmul.f32.gmra.mxu0 %v1787_v59 }
  0xaf   : > { %973 = vmatmul.f32.gmra.mxu1 %v1787_v59 }
  0xb4   : > { %681 = vmatmul.f32.gmra.mxu2 %v1827_v16 }
  0xb5   : > { %785 = vmatmul.f32.gmra.mxu3 %v453_v29 }
  0xb6   : > { %894 = vmatmul.f32.gmra.mxu0 %v1812_v9 }
  0xb7   : > { %977 = vmatmul.f32.gmra.mxu1 %v1812_v9 }
  0xbc   : > { %686 = vmatmul.f32.gmra.mxu2 %v1851_v42 }
  0xbd   : > { %791 = vmatmul.f32.gmra.mxu3 %v461_v50 }
  0xbe   : > { %898 = vmatmul.f32.gmra.mxu0 %v1836_v32 }
  0xbf   : > { %981 = vmatmul.f32.gmra.mxu1 %v1836_v32 }
  0xc4   : > { %691 = vmatmul.f32.gmra.mxu2 %v468_v0 }
  0xc5   : > { %797 = vmatmul.f32.gmra.mxu3 %v469_v13 }
  0xc6   : > { %902 = vmatmul.f32.gmra.mxu0 %v1860_v53 }
  0xc7   : > { %985 = vmatmul.f32.gmra.mxu1 %v1860_v53 }
  0xcc   : > { %696 = vmatmul.f32.gmra.mxu2 %v476_v24 }
  0xcd   : > { %803 = vmatmul.f32.gmra.mxu3 %v477_v39 }
  0xce   : > { %906 = vmatmul.f32.gmra.mxu0 %v475_v14 }
  0xcf   : > { %989 = vmatmul.f32.gmra.mxu1 %v475_v14 }
  0xd3   : > { %v425_v19 = vpop.f32.mrf.mxu0 }
  0xd4   : > { %701 = vmatmul.f32.gmra.mxu2 %v1728_v20  ;;  %v576_v26 = vpop.f32.mrf.mxu1 }
  0xd5   : > { %v1928_v28 = vadd.f32 %v576_v26, %v425_v19  ;;  %809 = vmatmul.f32.gmra.mxu3 %v485_v27 }
  0xd6   : > { %910 = vmatmul.f32.gmra.mxu0 %v1714_v12 }
  0xd7   : > { %v489_v31 = vpop.f32.mrf.mxu2  ;;  %993 = vmatmul.f32.gmra.mxu1 %v1714_v12 }
  0xd8   : > { %v608_v35 = vpop.f32.mrf.mxu3 }
  0xd9   : > { %v1934_v41 = vadd.f32 %v608_v35, %v489_v31  ;;  %v1026_v31 = vld [vmem:[%s1679_s6 + $0x8] sm:$0xff] }
  0xdb   : > { %v433_v47 = vpop.f32.mrf.mxu0 }
  0xdc   : > { %706 = vmatmul.f32.gmra.mxu2 %v1734_v25  ;;  %v580_v51 = vpop.f32.mrf.mxu1 }
  0xdd   : > { %v1937_v57 = vadd.f32 %v580_v51, %v433_v47  ;;  %815 = vmatmul.f32.gmra.mxu3 %v493_v33 }
  0xde   : > { %914 = vmatmul.f32.gmra.mxu0 %v1723_v18 }
  0xdf   : > { %v497_v20 = vpop.f32.mrf.mxu2  ;;  %997 = vmatmul.f32.gmra.mxu1 %v1723_v18 }
  0xe0   : > { %v612_v27 = vpop.f32.mrf.mxu3 }
  0xe1   : > { %v1943_v59 = vadd.f32 %v612_v27, %v497_v20 }
  0xe3   : > { %v441_v12 = vpop.f32.mrf.mxu0 }
  0xe4   : > { %711 = vmatmul.f32.gmra.mxu2 %v1764_v46  ;;  %v584_v1 = vpop.f32.mrf.mxu1 }
  0xe5   : > { %v1946_v7 = vadd.f32 %v584_v1, %v441_v12  ;;  %821 = vmatmul.f32.gmra.mxu3 %v501_v54 }
  0xe6   : > { %918 = vmatmul.f32.gmra.mxu0 %v1748_v34 }
  0xe7   : > { %v505_v25 = vpop.f32.mrf.mxu2  ;;  %1001 = vmatmul.f32.gmra.mxu1 %v1748_v34 }
  0xe8   : > { %v616_v33 = vpop.f32.mrf.mxu3 }
  0xe9   : > { %v1952_v9 = vadd.f32 %v616_v33, %v505_v25 }
  0xeb   : > { %v449_v18 = vpop.f32.mrf.mxu0 }
  0xec   : > { %716 = vmatmul.f32.gmra.mxu2 %v1794_v61  ;;  %v588_v16 = vpop.f32.mrf.mxu1 }
  0xed   : > { %v1955_v29 = vadd.f32 %v588_v16, %v449_v18  ;;  %827 = vmatmul.f32.gmra.mxu3 %v509_v4 }
  0xee   : > { %922 = vmatmul.f32.gmra.mxu0 %v1782_v55 }
  0xef   : > { %v513_v46 = vpop.f32.mrf.mxu2  ;;  %1005 = vmatmul.f32.gmra.mxu1 %v1782_v55 }
  0xf0   : > { %v620_v54 = vpop.f32.mrf.mxu3 }
  0xf1   : > { %v1961_v32 = vadd.f32 %v620_v54, %v513_v46  ;;  %v1027_v46 = vld [vmem:[%s1679_s6 + $0x10] sm:$0xff] }
  0xf3   : > { %v457_v34 = vpop.f32.mrf.mxu0 }
  0xf4   : > { %721 = vmatmul.f32.gmra.mxu2 %v1818_v11  ;;  %v592_v42 = vpop.f32.mrf.mxu1 }
  0xf5   : > { %v1964_v50 = vadd.f32 %v592_v42, %v457_v34  ;;  %833 = vmatmul.f32.gmra.mxu3 %v517_v22 }
  0xf6   : > { %926 = vmatmul.f32.gmra.mxu0 %v1808_v5 }
  0xf7   : > { %v521_v61 = vpop.f32.mrf.mxu2  ;;  %1009 = vmatmul.f32.gmra.mxu1 %v1808_v5 }
  0xf8   : > { %v624_v4 = vpop.f32.mrf.mxu3 }
  0xf9   : > { %v1970_v52 = vadd.f32 %v624_v4, %v521_v61 }
  0xfb   : > { %v465_v55 = vpop.f32.mrf.mxu0 }
  0xfc   : > { %726 = vmatmul.f32.gmra.mxu2 %v1842_v37  ;;  %v596_v53 = vpop.f32.mrf.mxu1 }
  0xfd   : > { %v1973_v56 = vadd.f32 %v596_v53, %v465_v55  ;;  %839 = vmatmul.f32.gmra.mxu3 %v525_v45 }
  0xfe   : > { %930 = vmatmul.f32.gmra.mxu0 %v1832_v23 }
  0xff   : > { %v529_v11 = vpop.f32.mrf.mxu2  ;;  %1013 = vmatmul.f32.gmra.mxu1 %v1832_v23 }
 0x100   : > { %v628_v22 = vpop.f32.mrf.mxu3 }
 0x101   : > { %v1979_v60 = vadd.f32 %v628_v22, %v529_v11 }
 0x103   : > { %v473_v5 = vpop.f32.mrf.mxu0 }
 0x104   : > { %731 = vmatmul.f32.gmra.mxu2 %v1866_v58  ;;  %v600_v62 = vpop.f32.mrf.mxu1 }
 0x105   : > { %v1982_v63 = vadd.f32 %v600_v62, %v473_v5  ;;  %845 = vmatmul.f32.gmra.mxu3 %v533_v6  ;;  %v1028_v62 = vld [vmem:[%s1679_s6 + $0x18] sm:$0xff] }
 0x106   : > { %934 = vmatmul.f32.gmra.mxu0 %v1856_v48 }
 0x107   : > { %v537_v37 = vpop.f32.mrf.mxu2  ;;  %1017 = vmatmul.f32.gmra.mxu1 %v1856_v48 }
 0x108   : > { %v632_v45 = vpop.f32.mrf.mxu3 }
 0x109   : > { %v1988_v0 = vadd.f32 %v632_v45, %v537_v37 }
 0x10b   : > { %v481_v23 = vpop.f32.mrf.mxu0 }
 0x10c   : > { %736 = vmatmul.f32.gmra.mxu2 %v1884_v17  ;;  %v604_v2 = vpop.f32.mrf.mxu1 }
 0x10d   : > { %v1991_v3 = vadd.f32 %v604_v2, %v481_v23  ;;  %851 = vmatmul.f32.gmra.mxu3 %v541_v36 }
 0x10e   : > { %938 = vmatmul.f32.gmra.mxu0 %v1878_v8 }
 0x10f   : > { %v545_v58 = vpop.f32.mrf.mxu2  ;;  %1021 = vmatmul.f32.gmra.mxu1 %v1878_v8 }
 0x110   : > { %v636_v6 = vpop.f32.mrf.mxu3 }
 0x111   : > { %v1997_v48 = vadd.f32 %v636_v6, %v545_v58 }
 0x113   : > { %v879_v10 = vpop.f32.mrf.mxu0 }
 0x114   : > { %v962_v13 = vpop.f32.mrf.mxu1 }
 0x117   : > { %v662_v14 = vpop.f32.mrf.mxu2 }
 0x118   : > { %v663_v15 = vadd.f32 %v662_v14, %v1928_v28  ;;  %v762_v21 = vpop.f32.mrf.mxu3 }
 0x11a   : > { %v763_v24 = vadd.f32 %v762_v21, %v663_v15  ;;  %v1029_v21 = vld [vmem:[%s1679_s6 + $0x20] sm:$0xff] }
 0x11b   : > { %v883_v30 = vpop.f32.mrf.mxu0 }
 0x11c   : > { %v880_v17 = vadd.f32 %v879_v10, %v763_v24  ;;  %v966_v36 = vpop.f32.mrf.mxu1 }
 0x11e   : > { %v963_v38 = vadd.f32 %v962_v13, %v880_v17 }
 0x11f   : > { %v667_v39 = vpop.f32.mrf.mxu2 }
 0x120   : > { %v668_v40 = vadd.f32 %v667_v39, %v1937_v57  ;;  %v768_v8 = vpop.f32.mrf.mxu3  ;;  %v1041_v35 = vadd.f32 %v1025_v44, %v963_v38 }
 0x122   : > { %v769_v43 = vadd.f32 %v768_v8, %v668_v40  ;;  %v1057_v12 = vmul.f32 %v1041_v35, %v1041_v35 }
 0x123   : > { %v887_v49 = vpop.f32.mrf.mxu0 }
 0x124   : > { %v884_v19 = vadd.f32 %v883_v30, %v769_v43  ;;  %v970_v26 = vpop.f32.mrf.mxu1 }
 0x126   : > { %v967_v47 = vadd.f32 %v966_v36, %v884_v19 }
 0x127   : > { %v672_v28 = vpop.f32.mrf.mxu2 }
 0x128   : > { %v1042_v51 = vadd.f32 %v1026_v31, %v967_v47  ;;  %v673_v20 = vadd.f32 %v672_v28, %v1946_v7  ;;  %v774_v27 = vpop.f32.mrf.mxu3 }
 0x12a   : > { %v1058_v1 = vmul.f32 %v1042_v51, %v1042_v51  ;;  %v775_v25 = vadd.f32 %v774_v27, %v673_v20 }
 0x12b   : > { %v891_v33 = vpop.f32.mrf.mxu0 }
 0x12c   : > { %v1073_v57 = vadd.f32 %v1058_v1, %v1057_v12  ;;  %v888_v18 = vadd.f32 %v887_v49, %v775_v25  ;;  %v974_v16 = vpop.f32.mrf.mxu1  ;;  %v1030_v49 = vld [vmem:[%s1679_s6 + $0x28] sm:$0xff]  ;;  %v1031_v1 = vld [vmem:[%s1679_s6 + $0x30] sm:$0xff] }
 0x12e   : > { %v971_v54 = vadd.f32 %v970_v26, %v888_v18 }
 0x12f   : > { %v677_v34 = vpop.f32.mrf.mxu2 }
 0x130   : > { %v1043_v42 = vadd.f32 %v1027_v46, %v971_v54  ;;  %v678_v61 = vadd.f32 %v677_v34, %v1955_v29  ;;  %v780_v4 = vpop.f32.mrf.mxu3 }
 0x132   : > { %v1059_v55 = vmul.f32 %v1043_v42, %v1043_v42  ;;  %v781_v53 = vadd.f32 %v780_v4, %v678_v61  ;;  %v1032_v4 = vld [vmem:[%s1679_s6 + $0x38] sm:$0xff] }
 0x133   : > { %v895_v11 = vpop.f32.mrf.mxu0 }
 0x134   : > { %v1074_v7 = vadd.f32 %v1073_v57, %v1059_v55  ;;  %v892_v22 = vadd.f32 %v891_v33, %v781_v53  ;;  %v978_v5 = vpop.f32.mrf.mxu1 }
 0x136   : > { %v975_v37 = vadd.f32 %v974_v16, %v892_v22 }
 0x137   : > { %v682_v45 = vpop.f32.mrf.mxu2 }
 0x138   : > { %v1044_v23 = vadd.f32 %v1028_v62, %v975_v37  ;;  %v683_v2 = vadd.f32 %v682_v45, %v1964_v50  ;;  %v786_v58 = vpop.f32.mrf.mxu3 }
 0x13a   : > { %v1060_v6 = vmul.f32 %v1044_v23, %v1044_v23  ;;  %v787_v10 = vadd.f32 %v786_v58, %v683_v2  ;;  %v1033_v2 = vld [vmem:[%s1679_s6 + $0x40] sm:$0xff] }
 0x13b   : > { %v899_v13 = vpop.f32.mrf.mxu0 }
 0x13c   : > { %v1075_v29 = vadd.f32 %v1074_v7, %v1060_v6  ;;  %v896_v14 = vadd.f32 %v895_v11, %v787_v10  ;;  %v982_v15 = vpop.f32.mrf.mxu1 }
 0x13e   : > { %v979_v24 = vadd.f32 %v978_v5, %v896_v14 }
 0x13f   : > { %v687_v30 = vpop.f32.mrf.mxu2 }
 0x140   : > { %v1045_v17 = vadd.f32 %v1029_v21, %v979_v24  ;;  %v688_v36 = vadd.f32 %v687_v30, %v1973_v56  ;;  %v792_v38 = vpop.f32.mrf.mxu3 }
 0x142   : > { %v1061_v39 = vmul.f32 %v1045_v17, %v1045_v17  ;;  %v793_v40 = vadd.f32 %v792_v38, %v688_v36  ;;  %v1034_v17 = vld [vmem:[%s1679_s6 + $0x48] sm:$0xff] }
 0x143   : > { %v903_v8 = vpop.f32.mrf.mxu0 }
 0x144   : > { %v1076_v50 = vadd.f32 %v1075_v29, %v1061_v39  ;;  %v900_v43 = vadd.f32 %v899_v13, %v793_v40  ;;  %v986_v44 = vpop.f32.mrf.mxu1 }
 0x146   : > { %v983_v19 = vadd.f32 %v982_v15, %v900_v43 }
 0x147   : > { %v692_v26 = vpop.f32.mrf.mxu2 }
 0x148   : > { %v1046_v31 = vadd.f32 %v1030_v49, %v983_v19  ;;  %v693_v35 = vadd.f32 %v692_v26, %v1982_v63  ;;  %v798_v47 = vpop.f32.mrf.mxu3  ;;  %v1035_v26 = vld [vmem:[%s1679_s6 + $0x50] sm:$0xff] }
 0x14a   : > { %v1062_v28 = vmul.f32 %v1046_v31, %v1046_v31  ;;  %v799_v51 = vadd.f32 %v798_v47, %v693_v35 }
 0x14b   : > { %v907_v20 = vpop.f32.mrf.mxu0 }
 0x14c   : > { %v1077_v56 = vadd.f32 %v1076_v50, %v1062_v28  ;;  %v904_v27 = vadd.f32 %v903_v8, %v799_v51  ;;  %v990_v12 = vpop.f32.mrf.mxu1 }
 0x14e   : > { %v987_v25 = vadd.f32 %v986_v44, %v904_v27 }
 0x14f   : > { %v697_v33 = vpop.f32.mrf.mxu2 }
 0x150   : > { %v1047_v57 = vadd.f32 %v1031_v1, %v987_v25  ;;  %v698_v18 = vadd.f32 %v697_v33, %v1991_v3  ;;  %v804_v16 = vpop.f32.mrf.mxu3  ;;  %v1036_v1 = vld [vmem:[%s1679_s6 + $0x58] sm:$0xff] }
 0x152   : > { %v1063_v46 = vmul.f32 %v1047_v57, %v1047_v57  ;;  %v805_v54 = vadd.f32 %v804_v16, %v698_v18 }
 0x153   : > { %v911_v34 = vpop.f32.mrf.mxu0 }
 0x154   : > { %v1078_v63 = vadd.f32 %v1077_v56, %v1063_v46  ;;  %v908_v42 = vadd.f32 %v907_v20, %v805_v54  ;;  %v994_v61 = vpop.f32.mrf.mxu1 }
 0x156   : > { %v991_v55 = vadd.f32 %v990_v12, %v908_v42  ;;  %v1037_v42 = vld [vmem:[%s1679_s6 + $0x60] sm:$0xff] }
 0x157   : > { %v702_v53 = vpop.f32.mrf.mxu2 }
 0x158   : > { %v1048_v11 = vadd.f32 %v1032_v4, %v991_v55  ;;  %v703_v7 = vadd.f32 %v702_v53, %v1934_v41  ;;  %v810_v22 = vpop.f32.mrf.mxu3 }
 0x15a   : > { %v1064_v5 = vmul.f32 %v1048_v11, %v1048_v11  ;;  %v811_v62 = vadd.f32 %v810_v22, %v703_v7 }
 0x15b   : > { %v915_v37 = vpop.f32.mrf.mxu0 }
 0x15c   : > { %v1079_v3 = vadd.f32 %v1078_v63, %v1064_v5  ;;  %v912_v45 = vadd.f32 %v911_v34, %v811_v62  ;;  %v998_v23 = vpop.f32.mrf.mxu1 }
 0x15e   : > { %v995_v58 = vadd.f32 %v994_v61, %v912_v45 }
 0x15f   : > { %v707_v6 = vpop.f32.mrf.mxu2 }
 0x160   : > { %v1049_v10 = vadd.f32 %v1033_v2, %v995_v58  ;;  %v708_v13 = vadd.f32 %v707_v6, %v1943_v59  ;;  %v816_v29 = vpop.f32.mrf.mxu3 }
 0x162   : > { %v1065_v14 = vmul.f32 %v1049_v10, %v1049_v10  ;;  %v817_v15 = vadd.f32 %v816_v29, %v708_v13 }
 0x163   : > { %v919_v21 = vpop.f32.mrf.mxu0 }
 0x164   : > { %v1080_v41 = vadd.f32 %v1079_v3, %v1065_v14  ;;  %v916_v24 = vadd.f32 %v915_v37, %v817_v15  ;;  %v1002_v30 = vpop.f32.mrf.mxu1  ;;  %v1038_v3 = vld [vmem:[%s1679_s6 + $0x68] sm:$0xff] }
 0x166   : > { %v999_v36 = vadd.f32 %v998_v23, %v916_v24 }
 0x167   : > { %v712_v38 = vpop.f32.mrf.mxu2 }
 0x168   : > { %v1050_v39 = vadd.f32 %v1034_v17, %v999_v36  ;;  %v713_v40 = vadd.f32 %v712_v38, %v1952_v9  ;;  %v822_v8 = vpop.f32.mrf.mxu3 }
 0x16a   : > { %v1066_v50 = vmul.f32 %v1050_v39, %v1050_v39  ;;  %v823_v43 = vadd.f32 %v822_v8, %v713_v40 }
 0x16b   : > { %v923_v44 = vpop.f32.mrf.mxu0 }
 0x16c   : > { %v1081_v59 = vadd.f32 %v1080_v41, %v1066_v50  ;;  %v920_v49 = vadd.f32 %v919_v21, %v823_v43  ;;  %v1006_v19 = vpop.f32.mrf.mxu1  ;;  %v1039_v21 = vld [vmem:[%s1679_s6 + $0x70] sm:$0xff]  ;;  %v1040_v43 = vld [vmem:[%s1679_s6 + $0x78] sm:$0xff] }
 0x16e   : > { %v1003_v31 = vadd.f32 %v1002_v30, %v920_v49 }
 0x16f   : > { %v717_v35 = vpop.f32.mrf.mxu2 }
 0x170   : > { %v1051_v47 = vadd.f32 %v1035_v26, %v1003_v31  ;;  %v718_v28 = vadd.f32 %v717_v35, %v1961_v32  ;;  %v828_v51 = vpop.f32.mrf.mxu3 }
 0x172   : > { %v1067_v20 = vmul.f32 %v1051_v47, %v1051_v47  ;;  %v829_v56 = vadd.f32 %v828_v51, %v718_v28 }
 0x173   : > { %v927_v27 = vpop.f32.mrf.mxu0 }
 0x174   : > { %v1082_v9 = vadd.f32 %v1081_v59, %v1067_v20  ;;  %v924_v12 = vadd.f32 %v923_v44, %v829_v56  ;;  %v1010_v25 = vpop.f32.mrf.mxu1 }
 0x176   : > { %v1007_v33 = vadd.f32 %v1006_v19, %v924_v12  ;;  %v1088_v19 = vld [vmem:[#allocation2] sm:$0xff] }
 0x177   : > { %v722_v57 = vpop.f32.mrf.mxu2 }
 0x178   : > { %v1052_v18 = vadd.f32 %v1036_v1, %v1007_v33  ;;  %v723_v16 = vadd.f32 %v722_v57, %v1970_v52  ;;  %v834_v46 = vpop.f32.mrf.mxu3 }
 0x17a   : > { %v1068_v54 = vmul.f32 %v1052_v18, %v1052_v18  ;;  %v835_v34 = vadd.f32 %v834_v46, %v723_v16 }
 0x17b   : > { %v931_v61 = vpop.f32.mrf.mxu0 }
 0x17c   : > { %v1083_v63 = vadd.f32 %v1082_v9, %v1068_v54  ;;  %v928_v32 = vadd.f32 %v927_v27, %v835_v34  ;;  %v1014_v53 = vpop.f32.mrf.mxu1 }
 0x17e   : > { %v1011_v4 = vadd.f32 %v1010_v25, %v928_v32 }
 0x17f   : > { %v727_v55 = vpop.f32.mrf.mxu2 }
 0x180   : > { %v1053_v11 = vadd.f32 %v1037_v42, %v1011_v4  ;;  %v728_v7 = vadd.f32 %v727_v55, %v1979_v60  ;;  %v840_v22 = vpop.f32.mrf.mxu3 }
 0x182   : > { %v1069_v5 = vmul.f32 %v1053_v11, %v1053_v11  ;;  %v841_v62 = vadd.f32 %v840_v22, %v728_v7 }
 0x183   : > { %v935_v2 = vpop.f32.mrf.mxu0 }
 0x184   : > { %v1084_v37 = vadd.f32 %v1083_v63, %v1069_v5  ;;  %v932_v52 = vadd.f32 %v931_v61, %v841_v62  ;;  %v1018_v13 = vpop.f32.mrf.mxu1 }
 0x186   : > { %v1015_v45 = vadd.f32 %v1014_v53, %v932_v52 }
 0x187   : > { %v732_v23 = vpop.f32.mrf.mxu2 }
 0x188   : > { %v1054_v58 = vadd.f32 %v1038_v3, %v1015_v45  ;;  %v733_v6 = vadd.f32 %v732_v23, %v1988_v0  ;;  %v846_v10 = vpop.f32.mrf.mxu3 }
 0x18a   : > { %v1070_v29 = vmul.f32 %v1054_v58, %v1054_v58  ;;  %v847_v14 = vadd.f32 %v846_v10, %v733_v6 }
 0x18b   : > { %v939_v38 = vpop.f32.mrf.mxu0 }
 0x18c   : > { %v1085_v15 = vadd.f32 %v1084_v37, %v1070_v29  ;;  %v936_v60 = vadd.f32 %v935_v2, %v847_v14  ;;  %v1022_v8 = vpop.f32.mrf.mxu1 }
 0x18e   : > { %v1019_v41 = vadd.f32 %v1018_v13, %v936_v60 }
 0x18f   : > { %v737_v24 = vpop.f32.mrf.mxu2 }
 0x190   : > { %v1055_v30 = vadd.f32 %v1039_v21, %v1019_v41  ;;  %v738_v17 = vadd.f32 %v737_v24, %v1997_v48  ;;  %v852_v36 = vpop.f32.mrf.mxu3 }
 0x192   : > { %v1071_v39 = vmul.f32 %v1055_v30, %v1055_v30  ;;  %v853_v40 = vadd.f32 %v852_v36, %v738_v17 }
 0x194   : > { %v1086_v50 = vadd.f32 %v1085_v15, %v1071_v39  ;;  %v940_v0 = vadd.f32 %v939_v38, %v853_v40 }
 0x196   : > { %v1023_v44 = vadd.f32 %v1022_v8, %v940_v0 }
 0x198   : > { %v1056_v59 = vadd.f32 %v1040_v43, %v1023_v44 }
 0x19a   : > { %v1072_v49 = vmul.f32 %v1056_v59, %v1056_v59 }
 0x19c   : > { %v1087_v26 = vadd.f32 %v1086_v50, %v1072_v49  ;;  %1094 = sbr.rel (%p1262_p10) target bundleno = 457 (0x1c9), region = 86 }
 0x19e   : > { %v1089_v31 = vadd.f32 %v1088_v19, %v1087_v26 }
 0x1a0   : > { %1090 = vst [vmem:[#allocation2] sm:$0xff] %v1089_v31 }
 0x1a1   : > { %v1102_v33 = vld [vmem:[%s328_s10] sm:$0x1] }
 0x1a7   : > { %v1095_v35 = vld [vmem:[#allocation2] sm:$0xff] }
 0x1a8   : > { %v1096_v48 = vrot.slane %v1095_v35, 4 }
 0x1aa   : > { %v1097_v47 = vadd.f32 %v1096_v48, %v1095_v35 }
 0x1ac   : > { %v1098_v28 = vrot.slane %v1097_v47, 2 }
 0x1ae   : > { %v1099_v51 = vadd.f32 %v1098_v28, %v1097_v47 }
 0x1b0   : > { %v1100_v20 = vrot.slane %v1099_v51, 1 }
 0x1b2   : > { %v1101_v56 = vadd.f32 %v1100_v20, %v1099_v51 }
 0x1b4   : > { %1371 = vrsqrt.f32 %v1101_v56  ;;  %vm1109_vm1 = vweird.f32 %v1101_v56 }
 0x1ba   : > { %v1372_v27 = vpop.eup %1371 }
 0x1bb   : > { %v1104_v9 = vmul.f32 %v1372_v27, %v1101_v56  ;;  %vm1110_vm2 = vweird.f32 %v1372_v27 }
 0x1bc   : > { %vm1111_vm3 = vmor %vm1109_vm1, %vm1110_vm2 }
 0x1bd   : > { %v1105_v12 = vmul.f32 %v1372_v27, %v1104_v9 }
 0x1bf   : > { %v1106_v1 = vmul.f32 0.5, %v1105_v12 }
 0x1c1   : > { %v1107_v25 = vsub.f32 1.5, %v1106_v1 }
 0x1c3   : > { %v1108_v57 = vmul.f32 %v1372_v27, %v1107_v25 }
 0x1c5   : > { %v1112_v18 = vsel %vm1111_vm3, %v1372_v27, %v1108_v57 }
 0x1c6   : > { %v1113_v16 = vmul.f32 %v1112_v18, %v1102_v33 }
 0x1c8   : > { %1114 = vst [vmem:[%s318_s9] sm:$0x1] %v1113_v16 }
 0x1c9 PF: > { %s2118_s29 = sld [smem:[#allocation17_spill]]  ;;  %s1126_s14 = sshll.u32 %s318_s9, 4  ;;  %s1127_s14 = int_to_ptr.vmem [resolvable:$true] %s1126_s14 }
 0x1ca   : > { %s1116_s18 = scalar_lea.sflag [#allocation5], %s1686_s11 }
 0x1cf   : > { %s1124_s12 = scalar_lea.hbm %s2118_s29, %s1511_s22  ;;  %s1421_s7 = scalar_lea.hbm %s2118_s29, 3 }
 0x1d0   : > { %s1128_s26 = sshll.u32 %s1124_s12, 4  ;;  %s1129_s26 = int_to_ptr.hbm [resolvable:$true] %s1128_s26 }
 0x1d1   : > { %s1415_s27 = sshra.s32 %s1129_s26, 4  ;;  %s1416_s27 = int_to_ptr.hbm [resolvable:$true] %s1415_s27 }
 0x1d2   : > { %s1417_s8 = scalar_lea.hbm %s1416_s27, 1  ;;  %p1422_p1 = scmp.lt.s32.totalorder %s1416_s27, %s2118_s29 }
 0x1d3   : > { %p1418_p11 = scmp.ne.s32.totalorder %s1416_s27, %s1417_s8  ;;  %p1423_p5 = scmp.lt.s32.totalorder %s1421_s7, %s1417_s8 }
 0x1d5   : > { %p1419_p12 = pnand %p1418_p11, %p1650_p13  ;;  %p1424_p2 = por %p1423_p5, %p1422_p1 }
 0x1d7   : > { %p1420_p0 = pneg %p1419_p12 }
 0x1d9   : > { %p1425_p3 = pnand %p1424_p2, %p1420_p0 }
 0x1db   : > { %1428 = shalt.err (!%p1425_p3)
}
 0x1dc   : > { %1272 = dma.vmem_to_hbm [thread:$0]  (%p1650_p13), %s1127_s14, 16, %s1129_s26, %s1116_s18  }
 0x1dd PF: > { %s2120_s22 = sld [smem:[#allocation10_spill]]  ;;  %p1278_p6 = scmp.ge.s32.totalorder %s1523_s25, 2 }
 0x1df   : > { %p1275_p8 = pnand %p1278_p6, %p1656_p4 }
 0x1e1   : > { %p1276_p9 = pneg %p1275_p8 }
 0x1e3   : > { %s1140_s9 = sand.u32 1, %s2120_s22  }
 0x1e4   : > { %s1141_s21 = scalar_lea.sflag [#allocation5], %s1140_s9 }
 0x1e5   : > { %1478 = dma.done.wait (%p1276_p9), %s1141_s21, 16  }
 0x1e6   : > { %1480 = vsyncadd (%p1276_p9), %s1141_s21, 4294967280  ;;  %s20_s25 = sadd.s32 1, %s1523_s25   ;;  %s2122_s13 = sld [smem:[#allocation13_spill]] }
 0x1e7   : > { %p17_p7 = scmp.ge.s32.totalorder %s20_s25, 14   ;;  %s2123_s4 = sld [smem:[#allocation14_spill]] }
 0x1e8   : > { %s2124_s6 = sld [smem:[#allocation11_spill]]  ;;  %s2126_s15 = smov %s1487_s16 }
 0x1e9   : > { %s2125_s12 = sld [smem:[#allocation12_spill]]  ;;  %s2127_s16 = smov %s1491_s17 }
 0x1ea   : > { %s2129_s18 = smov %s1499_s19  ;;  %s2130_s19 = smov %s1503_s20 }
 0x1eb   : > { %s2132_s21 = smov %s1515_s23  ;;  %s2133_s22 = smov %s1519_s24 }
 0x1ec   : > { %s2128_s17 = smov %s2122_s13  ;;  %19 = sbr.rel (!%p17_p7) target bundleno = 11 (0xb), region = 141 }
 0x1ed   : > { %s2131_s20 = smov %s2123_s4 }
 0x1ee   : > { %s2134_s23 = smov %s2124_s6 }
 0x1ef   : > { %s2135_s24 = smov %s2125_s12 }
 0x1f1   :  { %1146 = vsyncpa [#allocation4], 1 }
 0x1f2   :  { %1148 = vsyncpa [#allocation4 + $0x1], 1 }
 0x1f3   :  { %1149 = vsyncpa [#allocation5], 1 }
 0x1f4   :  { %1151 = vsyncpa [#allocation5 + $0x1], 1 }

</bundles_post_ra>
